<compile_context>
chip_gen: v7x
topology: tpu7x:2x2x1
jax: 0.10.0
libtpu: 0.0.40
codegen_flags: <defaults>
</compile_context>

<pallas_src>
import functools

import jax
import jax.numpy as jnp
from jax.experimental import pallas as pl
from jax.experimental.pallas import tpu as pltpu

BN_EPS = 1e-5            # nn.BatchNorm1d default eps
LEAKY_SLOPE = 0.01       # nn.LeakyReLU default negative_slope
SOFTPLUS_THRESH = 20.0   # nn.Softplus default threshold
ENC_EPS = 1e-4           # Encoder eps

H1 = 256
H2 = 512


def _round_up(n, m):
    return -(-n // m) * m


def _leaky_relu(x):
    return jnp.where(x >= 0, x, LEAKY_SLOPE * x)


def _softplus(x):
    # PyTorch Softplus(beta=1, threshold=20): linear above threshold.
    return jnp.where(x > SOFTPLUS_THRESH, x,
                     jnp.log1p(jnp.exp(jnp.minimum(x, SOFTPLUS_THRESH))))


def _epilogue_dtype():
    """bf16 activation epilogue on chips with a bf16 VPU (v6e/v7x); f32 otherwise."""
    try:
        kind = jax.devices()[0].device_kind.lower()
    except Exception:
        return jnp.float32
    if any(tag in kind for tag in ("v6", "6e", "v7", "7x")):
        return jnp.bfloat16
    return jnp.float32


# ----------------------------------- kernel -----------------------------------

def _encoder_kernel(x_ref,
                    w1_ref, b1_ref,
                    w2_ref, b2_ref,
                    wh_ref, bh_ref,
                    std_mask_ref,
                    out_ref, *, act_dtype):
    x = x_ref[...].astype(jnp.bfloat16)

    # layer1: Linear (BN folded into W/b) -> LeakyReLU   (Dropout: identity in eval)
    h1 = jnp.dot(x, w1_ref[...], preferred_element_type=jnp.float32)
    h1 = _leaky_relu(h1.astype(act_dtype) + b1_ref[...])

    # layer2: Linear (BN folded) -> LeakyReLU
    h2 = jnp.dot(h1.astype(jnp.bfloat16), w2_ref[...],
                 preferred_element_type=jnp.float32)
    h2 = _leaky_relu(h2.astype(act_dtype) + b2_ref[...])

    # fused heads (f32 epilogue): columns [0, z_dim) -> z_mean,
    # columns [z_dim, 2*z_dim) -> softplus + eps (selected by the resident mask).
    h = jnp.dot(h2.astype(jnp.bfloat16), wh_ref[...],
                preferred_element_type=jnp.float32) + bh_ref[...]
    out_ref[...] = jnp.where(std_mask_ref[...] > 0, _softplus(h) + ENC_EPS, h)


def _const_spec(shape):
    """Constant-index (VMEM-resident) block; single-buffered when the API supports it."""
    idx = lambda i: (0, 0)
    try:
        return pl.BlockSpec(shape, idx, pipeline_mode=pl.Buffered(1))
    except Exception:
        return pl.BlockSpec(shape, idx)


def encoder_forward(x, kparams, *, tb=2048, act_dtype=None):
    """x: (B, x_dim) f32.  kparams: output of fold_encoder_params.  Returns (z_mean, z_std)."""
    B, x_dim = x.shape
    z_dim = kparams["z_dim"]
    hp = kparams["wh"].shape[1]          # lane-dense padded head width (multiple of 128)

    if act_dtype is None:
        act_dtype = _epilogue_dtype()

    # Tile adapts to the batch: pad only to the 8-sublane boundary for small B, cap at
    # `tb` for large B, and keep >=2 grid steps when B allows (v7x megacore sharding).
    tb_eff = min(tb, max(8, _round_up((B + 1) // 2, 8)))
    pb = _round_up(B, tb_eff)
    if pb != B:
        x = jnp.pad(x, ((0, pb - B), (0, 0)))
    grid = (pb // tb_eff,)

    b1 = kparams["b1"].astype(act_dtype)
    b2 = kparams["b2"].astype(act_dtype)

    # VMEM budget: weights/biases/mask resident (counted double-buffered for safety),
    # x/out tiles double-buffered, f32 intermediates; 1.5x margin, capped below 64 MiB.
    w_bytes = 2 * 2 * (x_dim * H1 + H1 * H2 + H2 * hp)          # bf16 weights
    small_bytes = 2 * 4 * (H1 + H2 + 2 * hp)                    # biases + mask
    io_bytes = 2 * 4 * tb_eff * (x_dim + hp)                    # x / out tiles, 2 bufs
    mid_bytes = 4 * tb_eff * (H1 + H2 + hp)                     # h1 / h2 / head (f32)
    vmem_limit = int(min(max(1.5 * (w_bytes + small_bytes + io_bytes + mid_bytes),
                             16 * 1024 * 1024),
                         48 * 1024 * 1024))

    cost = pl.CostEstimate(
        flops=2 * pb * (x_dim * H1 + H1 * H2 + H2 * hp),
        transcendentals=2 * pb * hp,
        bytes_accessed=(4 * pb * (x_dim + hp)
                        + 2 * (x_dim * H1 + H1 * H2 + H2 * hp)
                        + 4 * (H1 + H2 + 2 * hp)),
    )

    out = pl.pallas_call(
        functools.partial(_encoder_kernel, act_dtype=act_dtype),
        out_shape=jax.ShapeDtypeStruct((pb, hp), jnp.float32),
        grid=grid,
        in_specs=[
            pl.BlockSpec((tb_eff, x_dim), lambda i: (i, 0)),   # x tile
            _const_spec((x_dim, H1)),                          # w1 (BN folded, bf16)
            _const_spec((1, H1)),                              # b1
            _const_spec((H1, H2)),                             # w2
            _const_spec((1, H2)),                              # b2
            _const_spec((H2, hp)),                             # fused heads weight
            _const_spec((1, hp)),                              # fused heads bias (f32)
            _const_spec((1, hp)),                              # softplus column mask
        ],
        out_specs=pl.BlockSpec((tb_eff, hp), lambda i: (i, 0)),
        compiler_params=pltpu.CompilerParams(
            dimension_semantics=("parallel",),
            vmem_limit_bytes=vmem_limit,
        ),
        cost_estimate=cost,
    )(x, kparams["w1"], b1, kparams["w2"], b2,
      kparams["wh"], kparams["bh"], kparams["std_mask"])

    z_mean = out[:B, :z_dim]
    z_std = out[:B, z_dim:2 * z_dim]
    return z_mean, z_std


# ----------------------------- parameter handling -----------------------------

def init_linear(key, in_dim, out_dim):
    # PyTorch default init: uniform(-1/sqrt(in), 1/sqrt(in)); weight stored (in, out).
    kw, kb = jax.random.split(key)
    bound = 1.0 / (in_dim ** 0.5)
    w = jax.random.uniform(kw, (in_dim, out_dim), jnp.float32, -bound, bound)
    b = jax.random.uniform(kb, (out_dim,), jnp.float32, -bound, bound)
    return w, b


def init_encoder_params(key, x_dim, z_dim):
    """Raw, PyTorch-equivalent parameters (f32)."""
    k1, k2, k3, k4 = jax.random.split(key, 4)
    w1, b1 = init_linear(k1, x_dim, H1)
    w2, b2 = init_linear(k2, H1, H2)
    wm, bm = init_linear(k3, H2, z_dim)
    ws, bs = init_linear(k4, H2, z_dim)

    def bn(n):  # gamma, beta, running_mean, running_var (inference defaults)
        return (jnp.ones((n,), jnp.float32), jnp.zeros((n,), jnp.float32),
                jnp.zeros((n,), jnp.float32), jnp.ones((n,), jnp.float32))

    g1, be1, m1, v1 = bn(H1)
    g2, be2, m2, v2 = bn(H2)
    return dict(x_dim=x_dim, z_dim=z_dim,
                w1=w1, b1=b1, g1=g1, be1=be1, m1=m1, v1=v1,
                w2=w2, b2=b2, g2=g2, be2=be2, m2=m2, v2=v2,
                wm=wm, bm=bm, ws=ws, bs=bs)


def fold_encoder_params(raw):
    """BN fold + head fusion + lane padding + bf16 weight cast + softplus mask (kernel-ready)."""
    z_dim = raw["z_dim"]

    s1 = raw["g1"] / jnp.sqrt(raw["v1"] + BN_EPS)
    t1 = raw["be1"] - raw["m1"] * s1
    w1f = raw["w1"] * s1[None, :]
    b1f = raw["b1"] * s1 + t1

    s2 = raw["g2"] / jnp.sqrt(raw["v2"] + BN_EPS)
    t2 = raw["be2"] - raw["m2"] * s2
    w2f = raw["w2"] * s2[None, :]
    b2f = raw["b2"] * s2 + t2

    # Fuse z_mean / z_std heads and pad the output dim to a multiple of 128 lanes.
    wh = jnp.concatenate([raw["wm"], raw["ws"]], axis=1)      # (512, 2*z_dim)
    bh = jnp.concatenate([raw["bm"], raw["bs"]], axis=0)      # (2*z_dim,)
    hp = max(128, _round_up(2 * z_dim, 128))
    wh = jnp.pad(wh, ((0, 0), (0, hp - 2 * z_dim)))
    bh = jnp.pad(bh, (0, hp - 2 * z_dim))

    # Precomputed softplus column selector (hoisted out of the per-step kernel body).
    col = jnp.arange(hp)
    std_mask = ((col >= z_dim) & (col < 2 * z_dim)).astype(jnp.float32)

    return dict(
        z_dim=z_dim,
        w1=w1f.astype(jnp.bfloat16), b1=b1f.reshape(1, H1),
        w2=w2f.astype(jnp.bfloat16), b2=b2f.reshape(1, H2),
        wh=wh.astype(jnp.bfloat16), bh=bh.reshape(1, hp),
        std_mask=std_mask.reshape(1, hp),
    )


# ----------------------------------- test ------------------------------------

if __name__ == "__main__":
    x_dim, z_dim, batch = 32, 16, 8

    key = jax.random.PRNGKey(0)
    kx, kp = jax.random.split(key)
    x = jax.random.normal(kx, (batch, x_dim), jnp.float32)

    raw = init_encoder_params(kp, x_dim, z_dim)
    kparams = fold_encoder_params(raw)

    act_dtype = _epilogue_dtype()
    z_mean, z_std = encoder_forward(x, kparams)
    jax.block_until_ready((z_mean, z_std))

    # Reference 1: mirrors the kernel math (bf16 matmuls, f32 acc, same epilogue dtype).
    def ref_kernel_math(x, kp):
        h1 = jnp.dot(x.astype(jnp.bfloat16), kp["w1"],
                     preferred_element_type=jnp.float32)
        h1 = _leaky_relu(h1.astype(act_dtype) + kp["b1"].astype(act_dtype))
        h2 = jnp.dot(h1.astype(jnp.bfloat16), kp["w2"],
                     preferred_element_type=jnp.float32)
        h2 = _leaky_relu(h2.astype(act_dtype) + kp["b2"].astype(act_dtype))
        h = jnp.dot(h2.astype(jnp.bfloat16), kp["wh"],
                    preferred_element_type=jnp.float32) + kp["bh"]
        zd = kp["z_dim"]
        return h[:, :zd], _softplus(h[:, zd:2 * zd]) + ENC_EPS

    # Reference 2: full f32 PyTorch-eval semantics on raw params (loose tol vs bf16).
    def ref_f32(x, p):
        s1 = p["g1"] / jnp.sqrt(p["v1"] + BN_EPS); t1 = p["be1"] - p["m1"] * s1
        s2 = p["g2"] / jnp.sqrt(p["v2"] + BN_EPS); t2 = p["be2"] - p["m2"] * s2
        h1 = _leaky_relu((x @ p["w1"] + p["b1"]) * s1 + t1)
        h2 = _leaky_relu((h1 @ p["w2"] + p["b2"]) * s2 + t2)
        zm = h2 @ p["wm"] + p["bm"]
        zs = _softplus(h2 @ p["ws"] + p["bs"]) + ENC_EPS
        return zm, zs

    zm_k, zs_k = ref_kernel_math(x, kparams)
    zm_f, zs_f = ref_f32(x, raw)

    tol = 2e-3 if act_dtype == jnp.float32 else 1e-2
    assert z_mean.shape == (batch, z_dim) and z_std.shape == (batch, z_dim)
    assert jnp.allclose(z_mean, zm_k, atol=tol, rtol=tol)
    assert jnp.allclose(z_std, zs_k, atol=tol, rtol=tol)
    assert jnp.allclose(z_mean, zm_f, atol=5e-2, rtol=5e-2)
    assert jnp.allclose(z_std, zs_f, atol=5e-2, rtol=5e-2)
    assert bool(jnp.all(z_std > 0.0))

    print("KERNEL_OK")
</pallas_src>

<mosaic_0001>
module attributes {stable_mosaic.version = 11 : i64} {
  func.func @_encoder_kernel(%arg0: i32, %arg1: memref<8x32xf32, #tpu.memory_space<vmem>>, %arg2: memref<32x256xbf16, #tpu.memory_space<vmem>>, %arg3: memref<1x256xf32, #tpu.memory_space<vmem>>, %arg4: memref<256x512xbf16, #tpu.memory_space<vmem>>, %arg5: memref<1x512xf32, #tpu.memory_space<vmem>>, %arg6: memref<512x128xbf16, #tpu.memory_space<vmem>>, %arg7: memref<1x128xf32, #tpu.memory_space<vmem>>, %arg8: memref<1x128xf32, #tpu.memory_space<vmem>>, %arg9: memref<8x128xf32, #tpu.memory_space<vmem>>) attributes {dimension_semantics = [#tpu.dimension_semantics<parallel>], iteration_bounds = array<i64: 1>, scalar_prefetch = 0 : i64, scratch_operands = 0 : i64, tpu.core_type = #tpu.core_type<tc>, window_params = [{transform_indices = @transform_0, window_bounds = array<i64: 8, 32>}, {pipeline_mode = #tpu.pipeline_mode<synchronous>, transform_indices = @transform_1, window_bounds = array<i64: 32, 256>}, {pipeline_mode = #tpu.pipeline_mode<synchronous>, transform_indices = @transform_2, window_bounds = array<i64: 1, 256>}, {pipeline_mode = #tpu.pipeline_mode<synchronous>, transform_indices = @transform_3, window_bounds = array<i64: 256, 512>}, {pipeline_mode = #tpu.pipeline_mode<synchronous>, transform_indices = @transform_4, window_bounds = array<i64: 1, 512>}, {pipeline_mode = #tpu.pipeline_mode<synchronous>, transform_indices = @transform_5, window_bounds = array<i64: 512, 128>}, {pipeline_mode = #tpu.pipeline_mode<synchronous>, transform_indices = @transform_6, window_bounds = array<i64: 1, 128>}, {pipeline_mode = #tpu.pipeline_mode<synchronous>, transform_indices = @transform_7, window_bounds = array<i64: 1, 128>}, {transform_indices = @transform_8, window_bounds = array<i64: 8, 128>}]} {
    %c0 = arith.constant 0 : index
    %c0_0 = arith.constant 0 : index
    %0 = vector.load %arg1[%c0, %c0_0] : memref<8x32xf32, #tpu.memory_space<vmem>>, vector<8x32xf32>
    %1 = arith.truncf %0 : vector<8x32xf32> to vector<8x32xbf16>
    %c0_1 = arith.constant 0 : index
    %c0_2 = arith.constant 0 : index
    %2 = vector.load %arg2[%c0_1, %c0_2] : memref<32x256xbf16, #tpu.memory_space<vmem>>, vector<32x256xbf16>
    %cst = arith.constant dense<0.000000e+00> : vector<8x256xf32>
    %3 = tpu.matmul %1, %2, %cst {dimension_numbers = #tpu.dot_dimension_numbers<[1], [0], [0], [1], [0, 0, 1, 1], [], []>} : vector<8x32xbf16>, vector<32x256xbf16>, vector<8x256xf32> -> vector<8x256xf32>
    %c0_3 = arith.constant 0 : index
    %c0_4 = arith.constant 0 : index
    %4 = vector.load %arg3[%c0_3, %c0_4] : memref<1x256xf32, #tpu.memory_space<vmem>>, vector<1x256xf32>
    %5 = vector.broadcast %4 : vector<1x256xf32> to vector<8x256xf32>
    %6 = arith.addf %3, %5 : vector<8x256xf32>
    %cst_5 = arith.constant 0.000000e+00 : f32
    %7 = vector.broadcast %cst_5 : f32 to vector<8x256xf32>
    %8 = arith.cmpf oge, %6, %7 : vector<8x256xf32>
    %cst_6 = arith.constant 0.00999999977 : f32
    %9 = vector.broadcast %cst_6 : f32 to vector<8x256xf32>
    %10 = arith.mulf %9, %6 : vector<8x256xf32>
    %11 = arith.select %8, %6, %10 : vector<8x256xi1>, vector<8x256xf32>
    %12 = arith.truncf %11 : vector<8x256xf32> to vector<8x256xbf16>
    %c0_7 = arith.constant 0 : index
    %c0_8 = arith.constant 0 : index
    %13 = vector.load %arg4[%c0_7, %c0_8] : memref<256x512xbf16, #tpu.memory_space<vmem>>, vector<256x512xbf16>
    %cst_9 = arith.constant dense<0.000000e+00> : vector<8x512xf32>
    %14 = tpu.matmul %12, %13, %cst_9 {dimension_numbers = #tpu.dot_dimension_numbers<[1], [0], [0], [1], [0, 0, 1, 1], [], []>} : vector<8x256xbf16>, vector<256x512xbf16>, vector<8x512xf32> -> vector<8x512xf32>
    %c0_10 = arith.constant 0 : index
    %c0_11 = arith.constant 0 : index
    %15 = vector.load %arg5[%c0_10, %c0_11] : memref<1x512xf32, #tpu.memory_space<vmem>>, vector<1x512xf32>
    %16 = vector.broadcast %15 : vector<1x512xf32> to vector<8x512xf32>
    %17 = arith.addf %14, %16 : vector<8x512xf32>
    %cst_12 = arith.constant 0.000000e+00 : f32
    %18 = vector.broadcast %cst_12 : f32 to vector<8x512xf32>
    %19 = arith.cmpf oge, %17, %18 : vector<8x512xf32>
    %cst_13 = arith.constant 0.00999999977 : f32
    %20 = vector.broadcast %cst_13 : f32 to vector<8x512xf32>
    %21 = arith.mulf %20, %17 : vector<8x512xf32>
    %22 = arith.select %19, %17, %21 : vector<8x512xi1>, vector<8x512xf32>
    %23 = arith.truncf %22 : vector<8x512xf32> to vector<8x512xbf16>
    %c0_14 = arith.constant 0 : index
    %c0_15 = arith.constant 0 : index
    %24 = vector.load %arg6[%c0_14, %c0_15] : memref<512x128xbf16, #tpu.memory_space<vmem>>, vector<512x128xbf16>
    %cst_16 = arith.constant dense<0.000000e+00> : vector<8x128xf32>
    %25 = tpu.matmul %23, %24, %cst_16 {dimension_numbers = #tpu.dot_dimension_numbers<[1], [0], [0], [1], [0, 0, 1, 1], [], []>} : vector<8x512xbf16>, vector<512x128xbf16>, vector<8x128xf32> -> vector<8x128xf32>
    %c0_17 = arith.constant 0 : index
    %c0_18 = arith.constant 0 : index
    %26 = vector.load %arg7[%c0_17, %c0_18] : memref<1x128xf32, #tpu.memory_space<vmem>>, vector<1x128xf32>
    %27 = vector.broadcast %26 : vector<1x128xf32> to vector<8x128xf32>
    %28 = arith.addf %25, %27 : vector<8x128xf32>
    %c0_19 = arith.constant 0 : index
    %c0_20 = arith.constant 0 : index
    %29 = vector.load %arg8[%c0_19, %c0_20] : memref<1x128xf32, #tpu.memory_space<vmem>>, vector<1x128xf32>
    %cst_21 = arith.constant 0.000000e+00 : f32
    %30 = vector.broadcast %cst_21 : f32 to vector<1x128xf32>
    %31 = arith.cmpf ogt, %29, %30 : vector<1x128xf32>
    %cst_22 = arith.constant 2.000000e+01 : f32
    %32 = vector.broadcast %cst_22 : f32 to vector<8x128xf32>
    %33 = arith.cmpf ogt, %28, %32 : vector<8x128xf32>
    %cst_23 = arith.constant 2.000000e+01 : f32
    %34 = vector.broadcast %cst_23 : f32 to vector<8x128xf32>
    %35 = arith.minimumf %28, %34 : vector<8x128xf32>
    %36 = math.exp %35 : vector<8x128xf32>
    %37 = math.log1p %36 : vector<8x128xf32>
    %38 = arith.select %33, %28, %37 : vector<8x128xi1>, vector<8x128xf32>
    %cst_24 = arith.constant 9.99999974E-5 : f32
    %39 = vector.broadcast %cst_24 : f32 to vector<8x128xf32>
    %40 = arith.addf %38, %39 : vector<8x128xf32>
    %41 = vector.shape_cast %31 : vector<1x128xi1> to vector<1x128xi1>
    %42 = vector.broadcast %41 : vector<1x128xi1> to vector<8x128xi1>
    %43 = arith.select %42, %40, %28 : vector<8x128xi1>, vector<8x128xf32>
    %c0_25 = arith.constant 0 : index
    %c0_26 = arith.constant 0 : index
    %44 = vector.load %arg9[%c0_25, %c0_26] : memref<8x128xf32, #tpu.memory_space<vmem>>, vector<8x128xf32>
    tpu.vector_store %arg9[%c0_25, %c0_26], %43 {strides = array<i32>} : memref<8x128xf32, #tpu.memory_space<vmem>>, vector<8x128xf32>,
    return
  }
  func.func @transform_0(%arg0: i32) -> (i32, i32) {
    %c0_i32 = arith.constant 0 : i32
    %c0_i32_0 = arith.constant 0 : i32
    return %arg0, %c0_i32 : i32, i32
  }
  func.func @transform_1(%arg0: i32) -> (i32, i32) {
    %c0_i32 = arith.constant 0 : i32
    %c0_i32_0 = arith.constant 0 : i32
    %c0_i32_1 = arith.constant 0 : i32
    return %c0_i32, %c0_i32_0 : i32, i32
  }
  func.func @transform_2(%arg0: i32) -> (i32, i32) {
    %c0_i32 = arith.constant 0 : i32
    %c0_i32_0 = arith.constant 0 : i32
    %c0_i32_1 = arith.constant 0 : i32
    return %c0_i32, %c0_i32_0 : i32, i32
  }
  func.func @transform_3(%arg0: i32) -> (i32, i32) {
    %c0_i32 = arith.constant 0 : i32
    %c0_i32_0 = arith.constant 0 : i32
    %c0_i32_1 = arith.constant 0 : i32
    return %c0_i32, %c0_i32_0 : i32, i32
  }
  func.func @transform_4(%arg0: i32) -> (i32, i32) {
    %c0_i32 = arith.constant 0 : i32
    %c0_i32_0 = arith.constant 0 : i32
    %c0_i32_1 = arith.constant 0 : i32
    return %c0_i32, %c0_i32_0 : i32, i32
  }
  func.func @transform_5(%arg0: i32) -> (i32, i32) {
    %c0_i32 = arith.constant 0 : i32
    %c0_i32_0 = arith.constant 0 : i32
    %c0_i32_1 = arith.constant 0 : i32
    return %c0_i32, %c0_i32_0 : i32, i32
  }
  func.func @transform_6(%arg0: i32) -> (i32, i32) {
    %c0_i32 = arith.constant 0 : i32
    %c0_i32_0 = arith.constant 0 : i32
    %c0_i32_1 = arith.constant 0 : i32
    return %c0_i32, %c0_i32_0 : i32, i32
  }
  func.func @transform_7(%arg0: i32) -> (i32, i32) {
    %c0_i32 = arith.constant 0 : i32
    %c0_i32_0 = arith.constant 0 : i32
    %c0_i32_1 = arith.constant 0 : i32
    return %c0_i32, %c0_i32_0 : i32, i32
  }
  func.func @transform_8(%arg0: i32) -> (i32, i32) {
    %c0_i32 = arith.constant 0 : i32
    %c0_i32_0 = arith.constant 0 : i32
    return %arg0, %c0_i32 : i32, i32
  }
}

</mosaic_0001>

<bundles_post_ra>
// kernel: tpu_custom_call.1
= control target key start
LH: loop header
LB: loop body
LE: loop exit
PB: predicated region body
PF: predicated region fallthrough
CT: control target
= control target key end

     0   :  { %13 = vsyncpa [#allocation3], 0  ;;  %s1624_s0 = inlined_call_operand.hbm [shape: f32[8,32], index: 0, kind: input, shape index: {}]   ;;  %s1625_s1 = inlined_call_operand.hbm [shape: bf16[32,256], index: 1, kind: input, shape index: {}]   ;;  %s1626_s2 = inlined_call_operand.vmem [shape: f32[1,256], index: 2, kind: input, shape index: {}]   ;;  %s1627_s3 = inlined_call_operand.hbm [shape: bf16[256,512], index: 3, kind: input, shape index: {}]   ;;  %s1628_s4 = inlined_call_operand.vmem [shape: f32[1,512], index: 4, kind: input, shape index: {}]   ;;  %s1629_s5 = inlined_call_operand.hbm [shape: bf16[512,128], index: 5, kind: input, shape index: {}]   ;;  %s1630_s6 = inlined_call_operand.vmem [shape: f32[1,128], index: 6, kind: input, shape index: {}]   ;;  %s1631_s7 = inlined_call_operand.vmem [shape: f32[1,128], index: 7, kind: input, shape index: {}]   ;;  %s1632_s8 = inlined_call_operand.hbm [shape: f32[8,128], index: 8, kind: output, shape index: {}]  }
   0x1   :  { %14 = vsyncpa [#allocation6], 0 }
   0x2   :  { %15 = vsyncpa [#allocation9], 0 }
   0x3   :  { %16 = vsyncpa [#allocation4], 0  ;;  %s1478_s27 = smov [#allocation5]   ;;  %s1360_s9 = scalar_lea.hbm %s1625_s1, 512 }
   0x4   :  { %s32_s28 = sshll.u32 %s1478_s27, 4  ;;  %p1361_p0 = scmp.ne.s32.totalorder %s1625_s1, %s1360_s9  ;;  %s33_s28 = int_to_ptr.vmem [resolvable:$true] %s32_s28 }
   0x5   :  { %p1364_p1 = scmp.lt.u32.totalorder %s1360_s9, %s1625_s1 }
   0x7   :  { %p1366_p2 = pnand %p1364_p1, %p1361_p0 }
   0x9   :  { %1369 = shalt.err (!%p1366_p2)
}
   0xa   :  { %s1370_s14 = scalar_lea.vmem %s33_s28, 512  ;;  %p1375_p4 = scmp.lt.s32.totalorder %s33_s28, %s33_s28 }
   0xb   :  { %p1371_p3 = scmp.ne.s32.totalorder %s33_s28, %s1370_s14  ;;  %p1376_p5 = scmp.lt.s32.totalorder %s1370_s14, %s1370_s14 }
   0xd   :  { %p1377_p6 = por %p1376_p5, %p1375_p4 }
   0xf   :  { %p1378_p7 = pnand %p1377_p6, %p1371_p3 }
  0x11   :  { %1381 = shalt.err (!%p1378_p7)
}
  0x12   :  { %s1479_s15 = smov 128   ;;  %s1480_s16 = smov 8  }
  0x13   :  { %38 = dma.hbm_to_vmem [thread:$0]  %s1625_s1, 512, %s33_s28, [#allocation6], %s1479_s15, %s1479_s15, %s1480_s16  }
  0x14   :  { %s1481_s19 = smov [#allocation2]   ;;  %s1482_s21 = smov [#allocation7]  }
  0x15   :  { %s23_s20 = sshll.u32 %s1481_s19, 4  ;;  %s46_s22 = sshll.u32 %s1482_s21, 4  ;;  %s24_s20 = int_to_ptr.vmem [resolvable:$true] %s23_s20  ;;  %s47_s22 = int_to_ptr.vmem [resolvable:$true] %s46_s22 }
  0x16   :  { %s1382_s25 = scalar_lea.hbm %s1624_s0, 128 }
  0x17   :  { %p1383_p8 = scmp.ne.s32.totalorder %s1624_s0, %s1382_s25  ;;  %p1386_p9 = scmp.lt.u32.totalorder %s1382_s25, %s1624_s0 }
  0x19   :  { %p1388_p10 = pnand %p1386_p9, %p1383_p8 }
  0x1b   :  { %1391 = shalt.err (!%p1388_p10)
}
  0x1c   :  { %s1392_s1 = scalar_lea.vmem %s24_s20, 128  ;;  %p1397_p12 = scmp.lt.s32.totalorder %s24_s20, %s24_s20 }
  0x1d   :  { %p1393_p11 = scmp.ne.s32.totalorder %s24_s20, %s1392_s1  ;;  %p1398_p13 = scmp.lt.s32.totalorder %s1392_s1, %s1392_s1 }
  0x1f   :  { %p1399_p0 = por %p1398_p13, %p1397_p12 }
  0x21   :  { %p1400_p1 = pnand %p1399_p0, %p1393_p11 }
  0x23   :  { %1403 = shalt.err (!%p1400_p1)
}
  0x24   :  { %26 = dma.hbm_to_vmem [thread:$0]  %s1624_s0, 128, %s24_s20, [#allocation3]  }
  0x25   :  { %s1404_s12 = scalar_lea.hbm %s1627_s3, 8192 }
  0x26   :  { %p1405_p2 = scmp.ne.s32.totalorder %s1627_s3, %s1404_s12  ;;  %p1408_p3 = scmp.lt.u32.totalorder %s1404_s12, %s1627_s3 }
  0x28   :  { %p1410_p4 = pnand %p1408_p3, %p1405_p2 }
  0x2a   :  { %1413 = shalt.err (!%p1410_p4)
}
  0x2b   :  { %s1414_s17 = scalar_lea.vmem %s47_s22, 8192  ;;  %p1419_p6 = scmp.lt.s32.totalorder %s47_s22, %s47_s22 }
  0x2c   :  { %p1415_p5 = scmp.ne.s32.totalorder %s47_s22, %s1414_s17  ;;  %p1420_p7 = scmp.lt.s32.totalorder %s1414_s17, %s1414_s17 }
  0x2e   :  { %p1421_p8 = por %p1420_p7, %p1419_p6 }
  0x30   :  { %p1422_p9 = pnand %p1421_p8, %p1415_p5 }
  0x32   :  { %1425 = shalt.err (!%p1422_p9)
}
  0x33   :  { %s1483_s0 = smov 256   ;;  %s1484_s18 = smov 16  }
  0x34   :  { %52 = dma.hbm_to_vmem [thread:$0]  %s1627_s3, 8192, %s47_s22, [#allocation6], %s1483_s0, %s1483_s0, %s1484_s18  }
  0x35   :  { %s1485_s21 = smov [#allocation8]   ;;  %s1426_s26 = scalar_lea.hbm %s1629_s5, 4096 }
  0x36   :  { %s60_s23 = sshll.u32 %s1485_s21, 4  ;;  %p1427_p10 = scmp.ne.s32.totalorder %s1629_s5, %s1426_s26  ;;  %s61_s23 = int_to_ptr.vmem [resolvable:$true] %s60_s23 }
  0x37   :  { %p1430_p11 = scmp.lt.u32.totalorder %s1426_s26, %s1629_s5 }
  0x39   :  { %p1432_p12 = pnand %p1430_p11, %p1427_p10 }
  0x3b   :  { %1435 = shalt.err (!%p1432_p12)
}
  0x3c   :  { %s1436_s28 = scalar_lea.vmem %s61_s23, 4096  ;;  %p1441_p0 = scmp.lt.s32.totalorder %s61_s23, %s61_s23 }
  0x3d   :  { %p1437_p13 = scmp.ne.s32.totalorder %s61_s23, %s1436_s28  ;;  %p1442_p1 = scmp.lt.s32.totalorder %s1436_s28, %s1436_s28 }
  0x3f   :  { %p1443_p2 = por %p1442_p1, %p1441_p0 }
  0x41   :  { %p1444_p3 = pnand %p1443_p2, %p1437_p13 }
  0x43   :  { %1447 = shalt.err (!%p1444_p3)
}
  0x44   :  { %s1486_s3 = smov 64   ;;  %s1487_s22 = smov 4  }
  0x45   :  { %66 = dma.hbm_to_vmem [thread:$0]  %s1629_s5, 4096, %s61_s23, [#allocation9], %s1486_s3, %s1486_s3, %s1487_s22  }
  0x46   :  { %1470 = dma.done.wait [#allocation3], 128  }
  0x47   :  { %1471 = vsyncadd [#allocation3], 4294967168 }
  0x48   :  { %1472 = dma.done.wait [#allocation6], 8704  }
  0x49   :  { %1473 = vsyncadd [#allocation6], 4294958592 }
  0x4a   :  { %1474 = dma.done.wait [#allocation9], 4096  }
  0x4b   :  { %1475 = vsyncadd [#allocation9], 4294963200  ;;  %v1488_v0 = vmov 0   ;;  %v1222_v1 = vld [vmem:[#allocation5 + $0x4] ss:$8 sps:$4 sm:$0xff]   ;;  %v84_v5 = vld [vmem:[#allocation2] sm:$0xff] }
  0x4c   :  { %158 = vmatprep.mubr.bf16.mxu0 %v1488_v0  ;;  %v1224_v2 = vld [vmem:[#allocation5] ss:$8 sps:$4 sm:$0xff]   ;;  %126 = vmatprep.subr.bf16.mxu0 %v1222_v1  ;;  %v1225_v3 = vld [vmem:[#allocation5 + $0x14] ss:$8 sps:$4 sm:$0xff]   ;;  %v1227_v4 = vld [vmem:[#allocation5 + $0x10] ss:$8 sps:$4 sm:$0xff]   ;;  %v85_v9 = vpack.c.bf16 %v84_v5, %v84_v5 }
  0x4d   :  { %127 = vmatpush1.bf16.msra.mxu0 %v1224_v2  ;;  %v1228_v6 = vld [vmem:[#allocation7 + $0x4] ss:$16 sps:$4 sm:$0xff]   ;;  %v1232_v7 = vld [vmem:[#allocation7 + $0xc] ss:$16 sps:$4 sm:$0xff]   ;;  %v1233_v8 = vld [vmem:[#allocation7] ss:$16 sps:$4 sm:$0xff]  }
  0x4e   :  { %128 = vmatprep.subr.bf16.mxu0 %v1225_v3  ;;  %581 = vmatprep.subr.bf16.mxu1 %v1228_v6  ;;  %v1234_v10 = vld [vmem:[#allocation7 + $0x24] ss:$16 sps:$4 sm:$0xff]   ;;  %vm122_vm0 = vcmask 261120   ;;  %v1230_v11 = vld [vmem:[#allocation7 + $0x8] ss:$16 sps:$4 sm:$0xff]  }
  0x4f   :  { %582 = vmatpush1.bf16.msra.mxu1 %v1233_v8  ;;  %v1238_v12 = vld [vmem:[#allocation7 + $0x2c] ss:$16 sps:$4 sm:$0xff]   ;;  %v1239_v13 = vld [vmem:[#allocation7 + $0x20] ss:$16 sps:$4 sm:$0xff]   ;;  %v1240_v14 = vld [vmem:[#allocation7 + $0x44] ss:$16 sps:$4 sm:$0xff]  }
  0x50   :  { %583 = vmatprep.subr.bf16.mxu1 %v1234_v10  ;;  %v1236_v15 = vld [vmem:[#allocation7 + $0x28] ss:$16 sps:$4 sm:$0xff]   ;;  %v1244_v16 = vld [vmem:[#allocation7 + $0x4c] ss:$16 sps:$4 sm:$0xff]   ;;  %v1245_v17 = vld [vmem:[#allocation7 + $0x40] ss:$16 sps:$4 sm:$0xff]   ;;  %v92_v10 = vlaneseq }
  0x51   :  { %129 = vmatpush1.bf16.msra.mxu0 %v1227_v4  ;;  %v1246_v18 = vld [vmem:[#allocation7 + $0x64] ss:$16 sps:$4 sm:$0xff]   ;;  %v1242_v19 = vld [vmem:[#allocation7 + $0x48] ss:$16 sps:$4 sm:$0xff]   ;;  %v1251_v20 = vld [vmem:[#allocation7 + $0x60] ss:$16 sps:$4 sm:$0xff]  }
  0x52   :  { %622 = vmatprep.subr.bf16.mxu0 %v1232_v7  ;;  %v1250_v21 = vld [vmem:[#allocation7 + $0x6c] ss:$16 sps:$4 sm:$0xff]   ;;  %v1252_v22 = vld [vmem:[#allocation7 + $0x84] ss:$16 sps:$4 sm:$0xff]   ;;  %v1248_v23 = vld [vmem:[#allocation7 + $0x68] ss:$16 sps:$4 sm:$0xff]  }
  0x53   :  { %584 = vmatpush1.bf16.msra.mxu1 %v1239_v13  ;;  %v1256_v24 = vld [vmem:[#allocation7 + $0x8c] ss:$16 sps:$4 sm:$0xff]   ;;  %v1257_v25 = vld [vmem:[#allocation7 + $0x80] ss:$16 sps:$4 sm:$0xff]   ;;  %v1258_v26 = vld [vmem:[#allocation7 + $0xa4] ss:$16 sps:$4 sm:$0xff]  }
  0x54   :  { %1068 = vmatmul.mubr.msk.bf16.vlgmr.msra.gmra.mrb[0].mxu0 %vm122_vm0, %v85_v9  ;;  %585 = vmatprep.subr.bf16.mxu1 %v1240_v14  ;;  %v1254_v27 = vld [vmem:[#allocation7 + $0x88] ss:$16 sps:$4 sm:$0xff]   ;;  %v1263_v28 = vld [vmem:[#allocation7 + $0xa0] ss:$16 sps:$4 sm:$0xff]   ;;  %v1262_v29 = vld [vmem:[#allocation7 + $0xac] ss:$16 sps:$4 sm:$0xff]  }
  0x55   :  { %623 = vmatpush1.bf16.msra.mxu0 %v1230_v11  ;;  %v1264_v30 = vld [vmem:[#allocation7 + $0xc4] ss:$16 sps:$4 sm:$0xff]   ;;  %v1260_v31 = vld [vmem:[#allocation7 + $0xa8] ss:$16 sps:$4 sm:$0xff]   ;;  %v1268_v32 = vld [vmem:[#allocation7 + $0xcc] ss:$16 sps:$4 sm:$0xff]  }
  0x56   :  { %624 = vmatprep.subr.bf16.mxu0 %v1238_v12  ;;  %v1269_v33 = vld [vmem:[#allocation7 + $0xc0] ss:$16 sps:$4 sm:$0xff]   ;;  %v1270_v34 = vld [vmem:[#allocation7 + $0xe4] ss:$16 sps:$4 sm:$0xff]   ;;  %v1266_v35 = vld [vmem:[#allocation7 + $0xc8] ss:$16 sps:$4 sm:$0xff]  }
  0x57   :  { %586 = vmatpush1.bf16.msra.mxu1 %v1245_v17  ;;  %v1275_v36 = vld [vmem:[#allocation7 + $0xe0] ss:$16 sps:$4 sm:$0xff]   ;;  %v1274_v37 = vld [vmem:[#allocation7 + $0xec] ss:$16 sps:$4 sm:$0xff]   ;;  %v1276_v38 = vld [vmem:[#allocation7 + $0x104] ss:$16 sps:$4 sm:$0xff]  }
  0x58   :  { %587 = vmatprep.subr.bf16.mxu1 %v1246_v18  ;;  %v1272_v39 = vld [vmem:[#allocation7 + $0xe8] ss:$16 sps:$4 sm:$0xff]   ;;  %v1280_v40 = vld [vmem:[#allocation7 + $0x10c] ss:$16 sps:$4 sm:$0xff]   ;;  %v1281_v41 = vld [vmem:[#allocation7 + $0x100] ss:$16 sps:$4 sm:$0xff]  }
  0x59   :  { %625 = vmatpush1.bf16.msra.mxu0 %v1236_v15  ;;  %v1282_v42 = vld [vmem:[#allocation7 + $0x124] ss:$16 sps:$4 sm:$0xff]   ;;  %v1278_v43 = vld [vmem:[#allocation7 + $0x108] ss:$16 sps:$4 sm:$0xff]   ;;  %v1287_v44 = vld [vmem:[#allocation7 + $0x120] ss:$16 sps:$4 sm:$0xff]  }
  0x5a   :  { %626 = vmatprep.subr.bf16.mxu0 %v1244_v16  ;;  %v1286_v45 = vld [vmem:[#allocation7 + $0x12c] ss:$16 sps:$4 sm:$0xff]   ;;  %v1288_v46 = vld [vmem:[#allocation7 + $0x144] ss:$16 sps:$4 sm:$0xff]   ;;  %v1284_v47 = vld [vmem:[#allocation7 + $0x128] ss:$16 sps:$4 sm:$0xff]  }
  0x5b   :  { %588 = vmatpush1.bf16.msra.mxu1 %v1251_v20  ;;  %v1293_v48 = vld [vmem:[#allocation7 + $0x140] ss:$16 sps:$4 sm:$0xff]   ;;  %v1292_v49 = vld [vmem:[#allocation7 + $0x14c] ss:$16 sps:$4 sm:$0xff]   ;;  %v1294_v50 = vld [vmem:[#allocation7 + $0x164] ss:$16 sps:$4 sm:$0xff]  }
  0x5c   :  { %589 = vmatprep.subr.bf16.mxu1 %v1252_v22  ;;  %v1290_v51 = vld [vmem:[#allocation7 + $0x148] ss:$16 sps:$4 sm:$0xff]   ;;  %v1299_v52 = vld [vmem:[#allocation7 + $0x160] ss:$16 sps:$4 sm:$0xff]   ;;  %v1298_v53 = vld [vmem:[#allocation7 + $0x16c] ss:$16 sps:$4 sm:$0xff]  }
  0x5d   :  { %627 = vmatpush1.bf16.msra.mxu0 %v1242_v19  ;;  %v1300_v54 = vld [vmem:[#allocation7 + $0x184] ss:$16 sps:$4 sm:$0xff]   ;;  %v1296_v55 = vld [vmem:[#allocation7 + $0x168] ss:$16 sps:$4 sm:$0xff]   ;;  %v1305_v56 = vld [vmem:[#allocation7 + $0x180] ss:$16 sps:$4 sm:$0xff]  }
  0x5e   :  { %628 = vmatprep.subr.bf16.mxu0 %v1250_v21  ;;  %v1304_v57 = vld [vmem:[#allocation7 + $0x18c] ss:$16 sps:$4 sm:$0xff]   ;;  %v1306_v58 = vld [vmem:[#allocation7 + $0x1a4] ss:$16 sps:$4 sm:$0xff]   ;;  %v1302_v59 = vld [vmem:[#allocation7 + $0x188] ss:$16 sps:$4 sm:$0xff]  }
  0x5f   :  { %590 = vmatpush1.bf16.msra.mxu1 %v1257_v25  ;;  %v1311_v60 = vld [vmem:[#allocation7 + $0x1a0] ss:$16 sps:$4 sm:$0xff]   ;;  %v1310_v61 = vld [vmem:[#allocation7 + $0x1ac] ss:$16 sps:$4 sm:$0xff]   ;;  %v1308_v62 = vld [vmem:[#allocation7 + $0x1a8] ss:$16 sps:$4 sm:$0xff]  }
  0x60   :  { %591 = vmatprep.subr.bf16.mxu1 %v1258_v26  ;;  %v1312_v63 = vld [vmem:[#allocation7 + $0x1c4] ss:$16 sps:$4 sm:$0xff]   ;;  %v1316_v1 = vld [vmem:[#allocation7 + $0x1cc] ss:$16 sps:$4 sm:$0xff]   ;;  %v1314_v2 = vld [vmem:[#allocation7 + $0x1c8] ss:$16 sps:$4 sm:$0xff]  }
  0x61   :  { %629 = vmatpush1.bf16.msra.mxu0 %v1248_v23  ;;  %v1317_v3 = vld [vmem:[#allocation7 + $0x1c0] ss:$16 sps:$4 sm:$0xff]   ;;  %v1318_v4 = vld [vmem:[#allocation7 + $0x1e4] ss:$16 sps:$4 sm:$0xff]   ;;  %v1320_v5 = vld [vmem:[#allocation7 + $0x1e8] ss:$16 sps:$4 sm:$0xff]  }
  0x62   :  { %630 = vmatprep.subr.bf16.mxu0 %v1256_v24  ;;  %v1322_v6 = vld [vmem:[#allocation7 + $0x1ec] ss:$16 sps:$4 sm:$0xff]   ;;  %v1323_v7 = vld [vmem:[#allocation7 + $0x1e0] ss:$16 sps:$4 sm:$0xff]   ;;  %v1584_v11 = vshrl.u32 %v92_v10, 7 }
  0x63   :  { %592 = vmatpush1.bf16.msra.mxu1 %v1263_v28  ;;  %v1324_v8 = vld [vmem:[#allocation8 + $0x40] sm:$0xff]   ;;  %v90_v13 = vld [vmem:[%s1626_s2] sm:$0x3] }
  0x64   :  { %593 = vmatprep.subr.bf16.mxu1 %v1264_v30  ;;  %v1325_v9 = vld [vmem:[#allocation8 + $0xc0] sm:$0xff]   ;;  %v1587_v12 = vsub.s32 0, %v1584_v11  ;;  %v98_v14 = vsub.s32 1, %v1584_v11 }
  0x65   :  { %631 = vmatpush1.bf16.msra.mxu0 %v1254_v27  ;;  %v1326_v28 = vld [vmem:[#allocation8] sm:$0xff]  }
  0x66   :  { %632 = vmatprep.subr.bf16.mxu0 %v1262_v29  ;;  %v95_v15 = vrot.slane %v90_v13, %v1587_v12  ;;  %v99_v16 = vrot.slane %v90_v13, %v98_v14  ;;  %v1327_v29 = vld [vmem:[#allocation8 + $0x80] sm:$0xff]  }
  0x67   :  { %594 = vmatpush1.bf16.msra.mxu1 %v1269_v33  ;;  %v1330_v33 = vld [vmem:[#allocation8 + $0x8] sm:$0xff]  }
  0x68   :  { %595 = vmatprep.subr.bf16.mxu1 %v1270_v34  ;;  %v1331_v34 = vld [vmem:[#allocation8 + $0x88] sm:$0xff]  }
  0x69   :  { %633 = vmatpush1.bf16.msra.mxu0 %v1260_v31  ;;  %v1328_v31 = vld [vmem:[#allocation8 + $0x48] sm:$0xff]  }
  0x6a   :  { %634 = vmatprep.subr.bf16.mxu0 %v1268_v32  ;;  %v1329_v32 = vld [vmem:[#allocation8 + $0xc8] sm:$0xff]  }
  0x6b   :  { %596 = vmatpush1.bf16.msra.mxu1 %v1275_v36  ;;  %v1333_v36 = vld [vmem:[#allocation8 + $0xd0] sm:$0xff]  }
  0x6c   :  { %597 = vmatprep.subr.bf16.mxu1 %v1276_v38  ;;  %v1335_v38 = vld [vmem:[#allocation8 + $0x90] sm:$0xff]  }
  0x6d   :  { %635 = vmatpush1.bf16.msra.mxu0 %v1266_v35  ;;  %v1332_v35 = vld [vmem:[#allocation8 + $0x50] sm:$0xff]  }
  0x6e   :  { %636 = vmatprep.subr.bf16.mxu0 %v1274_v37  ;;  %v1334_v37 = vld [vmem:[#allocation8 + $0x10] sm:$0xff]  }
  0x6f   :  { %598 = vmatpush1.bf16.msra.mxu1 %v1281_v41  ;;  %v1338_v41 = vld [vmem:[#allocation8 + $0x18] sm:$0xff]  }
  0x70   :  { %599 = vmatprep.subr.bf16.mxu1 %v1282_v42  ;;  %v1339_v42 = vld [vmem:[#allocation8 + $0x98] sm:$0xff]  }
  0x71   :  { %637 = vmatpush1.bf16.msra.mxu0 %v1272_v39  ;;  %v1336_v39 = vld [vmem:[#allocation8 + $0x58] sm:$0xff]  }
  0x72   :  { %638 = vmatprep.subr.bf16.mxu0 %v1280_v40  ;;  %v1337_v40 = vld [vmem:[#allocation8 + $0xd8] sm:$0xff]  }
  0x73   :  { %600 = vmatpush1.bf16.msra.mxu1 %v1287_v44  ;;  %v1341_v44 = vld [vmem:[#allocation8 + $0xe0] sm:$0xff]  }
  0x74   :  { %601 = vmatprep.subr.bf16.mxu1 %v1288_v46  ;;  %v1343_v46 = vld [vmem:[#allocation8 + $0xa0] sm:$0xff]  }
  0x75   :  { %639 = vmatpush1.bf16.msra.mxu0 %v1278_v43  ;;  %v1340_v43 = vld [vmem:[#allocation8 + $0x60] sm:$0xff]  }
  0x76   :  { %640 = vmatprep.subr.bf16.mxu0 %v1286_v45  ;;  %v1342_v45 = vld [vmem:[#allocation8 + $0x20] sm:$0xff]  }
  0x77   :  { %602 = vmatpush1.bf16.msra.mxu1 %v1293_v48  ;;  %v1345_v48 = vld [vmem:[#allocation8 + $0xe8] sm:$0xff]  }
  0x78   :  { %603 = vmatprep.subr.bf16.mxu1 %v1294_v50  ;;  %v1347_v50 = vld [vmem:[#allocation8 + $0xa8] sm:$0xff]  }
  0x79   :  { %641 = vmatpush1.bf16.msra.mxu0 %v1284_v47  ;;  %v1344_v47 = vld [vmem:[#allocation8 + $0x68] sm:$0xff]  }
  0x7a   :  { %642 = vmatprep.subr.bf16.mxu0 %v1292_v49  ;;  %v1346_v49 = vld [vmem:[#allocation8 + $0x28] sm:$0xff]  }
  0x7b   :  { %604 = vmatpush1.bf16.msra.mxu1 %v1299_v52  ;;  %v1349_v52 = vld [vmem:[#allocation8 + $0xf0] sm:$0xff]  }
  0x7c   :  { %605 = vmatprep.subr.bf16.mxu1 %v1300_v54  ;;  %v1351_v54 = vld [vmem:[#allocation8 + $0xb0] sm:$0xff]  }
  0x7d   :  { %643 = vmatpush1.bf16.msra.mxu0 %v1290_v51  ;;  %v1348_v51 = vld [vmem:[#allocation8 + $0x70] sm:$0xff]  }
  0x7e   :  { %644 = vmatprep.subr.bf16.mxu0 %v1298_v53  ;;  %v1350_v53 = vld [vmem:[#allocation8 + $0x30] sm:$0xff]  }
  0x7f   :  { %606 = vmatpush1.bf16.msra.mxu1 %v1305_v56  ;;  %v1353_v56 = vld [vmem:[#allocation8 + $0xf8] sm:$0xff]  }
  0x80   :  { %607 = vmatprep.subr.bf16.mxu1 %v1306_v58  ;;  %v1355_v58 = vld [vmem:[#allocation8 + $0xb8] sm:$0xff]  }
  0x81   :  { %645 = vmatpush1.bf16.msra.mxu0 %v1296_v55  ;;  %v1352_v55 = vld [vmem:[#allocation8 + $0x78] sm:$0xff]  }
  0x82   :  { %646 = vmatprep.subr.bf16.mxu0 %v1304_v57  ;;  %v1354_v57 = vld [vmem:[#allocation8 + $0x38] sm:$0xff]  }
  0x83   :  { %608 = vmatpush1.bf16.msra.mxu1 %v1311_v60  ;;  %v239_v60 = vld [vmem:[%s1628_s4] sm:$0xf] }
  0x84   :  { %609 = vmatprep.subr.bf16.mxu1 %v1312_v63 }
  0x85   :  { %647 = vmatpush1.bf16.msra.mxu0 %v1302_v59  ;;  %v251_v59 = vsub.s32 2, %v1584_v11 }
  0x86   :  { %648 = vmatprep.subr.bf16.mxu0 %v1310_v61  ;;  %v255_v61 = vsub.s32 3, %v1584_v11 }
  0x87   :  { %610 = vmatpush1.bf16.msra.mxu1 %v1317_v3  ;;  %v252_v63 = vrot.slane %v239_v60, %v251_v59 }
  0x88   :  { %611 = vmatprep.subr.bf16.mxu1 %v1318_v4 }
  0x89   :  { %649 = vmatpush1.bf16.msra.mxu0 %v1308_v62  ;;  %v244_v62 = vrot.slane %v239_v60, %v1587_v12 }
  0x8a   :  { %650 = vmatprep.subr.bf16.mxu0 %v1316_v1  ;;  %v248_v1 = vrot.slane %v239_v60, %v98_v14 }
  0x8b   :  { %612 = vmatpush1.bf16.msra.mxu1 %v1323_v7 }
  0x8c   :  { %1166 = vmatprep.subr.bf16.mxu1 %v1324_v8 }
  0x8d   :  { %651 = vmatpush1.bf16.msra.mxu0 %v1314_v2  ;;  %v256_v2 = vrot.slane %v239_v60, %v255_v61 }
  0x8e   :  { %652 = vmatprep.subr.bf16.mxu0 %v1322_v6 }
  0x91   :  { %653 = vmatpush1.bf16.msra.mxu0 %v1320_v5 }
  0x92   :  { %1188 = vmatprep.subr.bf16.mxu0 %v1325_v9 }
 0x127   :  { %v160_v17 = vpop.f32.mrb[0].mxu0 }
 0x128   :  { %v161_v18 = vadd.f32 %v160_v17, %v95_v15  ;;  %v162_v19 = vpop.f32.mrb[1].mxu0 }
 0x129   :  { %v163_v20 = vadd.f32 %v162_v19, %v99_v16  ;;  %v164_v21 = vpop.f32.mrb[2].mxu0 }
 0x12a   :  { %vm167_vm1 = vcmp.ge.f32.partialorder %v161_v18, 0.0  ;;  %v169_v22 = vmul.f32 0.01, %v161_v18  ;;  %v165_v23 = vpop.f32.mrb[3].mxu0 }
 0x12b   :  { %v170_v24 = vmul.f32 0.01, %v163_v20  ;;  %vm168_vm2 = vcmp.ge.f32.partialorder %v163_v20, 0.0 }
 0x12c   :  { %v171_v25 = vsel %vm167_vm1, %v161_v18, %v169_v22 }
 0x12d   :  { %v172_v26 = vsel %vm168_vm2, %v163_v20, %v170_v24  ;;  %v173_v30 = vpack.c.bf16 %v171_v25, %v171_v25 }
 0x12e   :  { %v174_v27 = vpack.c.bf16 %v172_v26, %v172_v26 }
 0x130   :  { %613 = vmatprep.mubr.bf16.mxu1 %v174_v27  ;;  %654 = vmatprep.mubr.bf16.mxu0 %v174_v27 }
 0x131   :  { %614 = vmatmul.mubr.bf16.vlgmr.msra.gmra.mrb[0].mxu1 %v173_v30  ;;  %655 = vmatmul.mubr.bf16.vlgmr.msra.gmra.mrb[4].mxu0 %v173_v30  ;;  %v1133_v30 = vld [vmem:[%s1630_s6] ss:$0 sm:$0xff]  ;;  %s1489_s6 = smov [#allocation10]  }
 0x132   :  { %1167 = vmatpush3.bf16.msra.mxu1 %v1326_v28  ;;  %1189 = vmatpush3.bf16.msra.mxu0 %v1327_v29  ;;  %s1053_s16 = sshll.u32 %s1489_s6, 4  ;;  %s1054_s16 = int_to_ptr.vmem [resolvable:$true] %s1053_s16 }
 0x133   :  { %1168 = vmatprep.subr.bf16.mxu1 %v1328_v31  ;;  %1190 = vmatprep.subr.bf16.mxu0 %v1329_v32  ;;  %p1453_p5 = scmp.lt.s32.totalorder %s1054_s16, %s1054_s16 }
 0x136   :  { %1169 = vmatpush3.bf16.msra.mxu1 %v1330_v33  ;;  %1191 = vmatpush3.bf16.msra.mxu0 %v1331_v34 }
 0x137   :  { %1170 = vmatprep.subr.bf16.mxu1 %v1332_v35  ;;  %1192 = vmatprep.subr.bf16.mxu0 %v1333_v36 }
 0x13a   :  { %1171 = vmatpush3.bf16.msra.mxu1 %v1334_v37  ;;  %1193 = vmatpush3.bf16.msra.mxu0 %v1335_v38 }
 0x13b   :  { %1172 = vmatprep.subr.bf16.mxu1 %v1336_v39  ;;  %1194 = vmatprep.subr.bf16.mxu0 %v1337_v40 }
 0x13e   :  { %1173 = vmatpush3.bf16.msra.mxu1 %v1338_v41  ;;  %1195 = vmatpush3.bf16.msra.mxu0 %v1339_v42 }
 0x13f   :  { %1174 = vmatprep.subr.bf16.mxu1 %v1340_v43  ;;  %1196 = vmatprep.subr.bf16.mxu0 %v1341_v44 }
 0x142   :  { %1175 = vmatpush3.bf16.msra.mxu1 %v1342_v45  ;;  %1197 = vmatpush3.bf16.msra.mxu0 %v1343_v46  ;;  %v1022_v45 = vld [vmem:[%s1631_s7] sm:$0x1]  ;;  %s1448_s7 = scalar_lea.vmem %s1054_s16, 128 }
 0x143   :  { %1176 = vmatprep.subr.bf16.mxu1 %v1344_v47  ;;  %1198 = vmatprep.subr.bf16.mxu0 %v1345_v48  ;;  %vm1023_vm7 = vcmp.gt.f32.partialorder %v1022_v45, 0.0  ;;  %p1449_p4 = scmp.ne.s32.totalorder %s1054_s16, %s1448_s7  ;;  %p1454_p6 = scmp.lt.s32.totalorder %s1448_s7, %s1448_s7 }
 0x144   :  { %v1039_v47 = vsel %vm1023_vm7, 1, %v1488_v0 }
 0x145   :  { %p1455_p7 = por %p1454_p6, %p1453_p5 }
 0x146   :  { %1177 = vmatpush3.bf16.msra.mxu1 %v1346_v49  ;;  %1199 = vmatpush3.bf16.msra.mxu0 %v1347_v50 }
 0x147   :  { %1178 = vmatprep.subr.bf16.mxu1 %v1348_v51  ;;  %1200 = vmatprep.subr.bf16.mxu0 %v1349_v52  ;;  %v1043_v51 = vrot.slane %v1039_v47, %v1587_v12  ;;  %p1456_p8 = pnand %p1455_p7, %p1449_p4 }
 0x149   :  { %vm1044_vm10 = vcmp.eq.s32.totalorder %v1043_v51, 1 }
 0x14a   :  { %1179 = vmatpush3.bf16.msra.mxu1 %v1350_v53  ;;  %1201 = vmatpush3.bf16.msra.mxu0 %v1351_v54 }
 0x14b   :  { %1180 = vmatprep.subr.bf16.mxu1 %v1352_v55  ;;  %1202 = vmatprep.subr.bf16.mxu0 %v1353_v56 }
 0x14e   :  { %1181 = vmatpush3.bf16.msra.mxu1 %v1354_v57  ;;  %1203 = vmatpush3.bf16.msra.mxu0 %v1355_v58 }
 0x204   :  { %v615_v3 = vpop.f32.mrb[0].mxu1  ;;  %v656_v4 = vpop.f32.mrb[4].mxu0 }
 0x205   :  { %v616_v5 = vadd.f32 %v615_v3, %v244_v62  ;;  %v657_v6 = vadd.f32 %v656_v4, %v252_v63  ;;  %v617_v7 = vpop.f32.mrb[1].mxu1  ;;  %v658_v8 = vpop.f32.mrb[5].mxu0 }
 0x206   :  { %v618_v9 = vadd.f32 %v617_v7, %v248_v1  ;;  %v659_v10 = vadd.f32 %v658_v8, %v256_v2  ;;  %v619_v13 = vpop.f32.mrb[2].mxu1  ;;  %v660_v15 = vpop.f32.mrb[6].mxu0 }
 0x207   :  { %vm663_vm3 = vcmp.ge.f32.partialorder %v616_v5, 0.0  ;;  %v667_v16 = vmul.f32 0.01, %v616_v5  ;;  %vm665_vm4 = vcmp.ge.f32.partialorder %v657_v6, 0.0  ;;  %v669_v17 = vmul.f32 0.01, %v657_v6 }
 0x208   :  { %vm664_vm5 = vcmp.ge.f32.partialorder %v618_v9, 0.0  ;;  %v668_v18 = vmul.f32 0.01, %v618_v9  ;;  %vm666_vm6 = vcmp.ge.f32.partialorder %v659_v10, 0.0  ;;  %v670_v11 = vmul.f32 0.01, %v659_v10 }
 0x209   :  { %v671_v14 = vsel %vm663_vm3, %v616_v5, %v667_v16  ;;  %v673_v19 = vsel %vm665_vm4, %v657_v6, %v669_v17  ;;  %v620_v20 = vpop.f32.mrb[3].mxu1  ;;  %v661_v21 = vpop.f32.mrb[7].mxu0 }
 0x20a   :  { %v672_v22 = vsel %vm664_vm5, %v618_v9, %v668_v18  ;;  %v674_v23 = vsel %vm666_vm6, %v659_v10, %v670_v11  ;;  %v675_v26 = vpack.c.bf16 %v671_v14, %v671_v14  ;;  %v677_v27 = vpack.c.bf16 %v673_v19, %v673_v19 }
 0x20b   :  { %v676_v24 = vpack.c.bf16 %v672_v22, %v672_v22  ;;  %v678_v25 = vpack.c.bf16 %v674_v23, %v674_v23 }
 0x20d   :  { %974 = vmatprep.mubr.bf16.mxu1 %v676_v24  ;;  %1014 = vmatprep.mubr.bf16.mxu0 %v678_v25 }
 0x20e   :  { %975 = vmatmul.mubr.bf16.vlgmr.msra.gmra.mrb[4].mxu1 %v675_v26  ;;  %1015 = vmatmul.mubr.bf16.vlgmr.msra.gmra.mrb[8].mxu0 %v677_v27 }
 0x2e1   :  { %v1182_v28 = vpop.f32.mrb[4].mxu1  ;;  %v1204_v29 = vpop.f32.mrb[8].mxu0 }
 0x2e2   :  { %v1183_v31 = vpop.f32.mrb[5].mxu1  ;;  %v1205_v32 = vpop.f32.mrb[9].mxu0 }
 0x2e3   :  { %v1184_v33 = vadd.f32 %v1183_v31, %v1182_v28  ;;  %v1206_v34 = vadd.f32 %v1205_v32, %v1204_v29  ;;  %v1185_v35 = vpop.f32.mrb[6].mxu1  ;;  %v1207_v36 = vpop.f32.mrb[10].mxu0 }
 0x2e4   :  { %v1186_v37 = vpop.f32.mrb[7].mxu1  ;;  %v1208_v38 = vpop.f32.mrb[11].mxu0 }
 0x2e5   :  { %v977_v39 = vadd.f32 %v1184_v33, %v1133_v30 }
 0x2e7   :  { %v1017_v40 = vadd.f32 %v1206_v34, %v977_v39 }
 0x2e9   :  { %v1025_v41 = vmin.f32 %v1017_v40, 20.0  ;;  %vm1024_vm9 = vcmp.gt.f32.partialorder %v1017_v40, 20.0 }
 0x2eb   :  { %v1026_v42 = vmul.f32 1.442695, %v1025_v41 }
 0x2ed   :  { %1356 = vpow2.f32 %v1026_v42 }
 0x2f7   :  { %v1357_v43 = vpop.eup %1356 }
 0x2f8   :  { %v1028_v44 = vadd.f32 1.0, %v1357_v43  ;;  %v1031_v46 = vmul.f32 -0.5, %v1357_v43  ;;  %v1034_v49 = vand.u32 2147483647, %v1357_v43 }
 0x2fa   :  { %1358 = vlog2.f32 %v1028_v44  ;;  %v1032_v48 = vadd.f32 1.0, %v1031_v46  ;;  %vm1035_vm8 = vcmp.lt.f32.partialorder %v1034_v49, 0.0004427343 }
 0x2fc   :  { %v1033_v53 = vmul.f32 %v1357_v43, %v1032_v48 }
 0x304   :  { %v1359_v50 = vpop.eup %1358 }
 0x305   :  { %v1030_v52 = vmul.f32 0.6931472, %v1359_v50 }
 0x307   :  { %v1036_v54 = vsel %vm1035_vm8, %v1033_v53, %v1030_v52 }
 0x308   :  { %v1037_v55 = vsel %vm1024_vm9, %v1017_v40, %v1036_v54 }
 0x309   :  { %v1038_v56 = vadd.f32 0.0001, %v1037_v55 }
 0x30b   :  { %v1045_v57 = vsel %vm1044_vm10, %v1038_v56, %v1017_v40 }
 0x30c   :  { %1046 = vst [vmem:[#allocation10] sm:$0xff] %v1045_v57 }
 0x30d   :  { %1459 = shalt.err (!%p1456_p8)
}
 0x30e   :  { %s1460_s18 = scalar_lea.hbm %s1632_s8, 128 }
 0x30f   :  { %p1461_p9 = scmp.ne.s32.totalorder %s1632_s8, %s1460_s18  ;;  %p1464_p10 = scmp.lt.u32.totalorder %s1460_s18, %s1632_s8 }
 0x311   :  { %p1466_p11 = pnand %p1464_p10, %p1461_p9 }
 0x313   :  { %1469 = shalt.err (!%p1466_p11)
}
 0x314   :  { %1056 = dma.vmem_to_hbm [thread:$0]  %s1054_s16, 128, %s1632_s8, [#allocation4]  }
 0x315   :  { %1476 = dma.done.wait [#allocation4], 128  }
 0x316   :  { %1477 = vsyncadd [#allocation4], 4294967168 }
 0x317   :  { %1060 = vsyncpa [#allocation3], 1 }
 0x318   :  { %1061 = vsyncpa [#allocation6], 1 }
 0x319   :  { %1062 = vsyncpa [#allocation9], 1 }
 0x31a   :  { %1063 = vsyncpa [#allocation4], 1 }

</bundles_post_ra>
